<compile_context>
chip_gen: v7x
topology: tpu7x:2x2x1
jax: 0.10.0
libtpu: 0.0.40
codegen_flags: <defaults>
</compile_context>

<pallas_src>
import jax
import jax.numpy as jnp
from jax.experimental import pallas as pl
from jax.experimental.pallas import tpu as pltpu

_SUBLANE = 8


def _round_up(x, m):
    return ((x + m - 1) // m) * m


def _de_mlp_kernel(x_ref, w1_ref, w2_ref, o_ref):
    # Hidden layer: x @ w1, ReLU (MXU matmul, f32 accumulate; ReLU is VALU
    # filler in otherwise-free slots).
    h = jnp.maximum(
        jnp.dot(x_ref[...], w1_ref[...], preferred_element_type=jnp.float32),
        0.0)
    # Match w2's dtype so a bf16 weight path uses the single-pass bf16 MXU
    # (no-op when weights are f32).  Accumulation stays f32.
    h = h.astype(w2_ref.dtype)
    # Output layer: h @ w2, ReLU.
    y = jnp.maximum(
        jnp.dot(h, w2_ref[...], preferred_element_type=jnp.float32),
        0.0)
    o_ref[...] = y.astype(o_ref.dtype)


def de_model_forward(txt_fts, w1, w2, *, block_rows=2048, compute_dtype=None):
    """Fused DEModel forward (eval-mode dropout == identity).

    txt_fts: (B, dim_txt_ft)
    w1:      (dim_txt_ft, hidden)   -- pre-transposed nn.Linear weight
    w2:      (hidden, dim_vis_ft)   -- pre-transposed nn.Linear weight
    compute_dtype: optionally cast inputs/weights (e.g. jnp.bfloat16) for the
                   MXU.  NOTE: for best HBM efficiency the caller should
                   provide bf16 inputs/weights directly instead of relying on
                   this in-wrapper cast (the cast is an extra HBM round trip).
                   Accumulation stays f32.  Output dtype = original input dtype.
    """
    B, dim_txt = txt_fts.shape
    hidden = w1.shape[1]
    dim_vis = w2.shape[1]
    assert w1.shape[0] == dim_txt and w2.shape[0] == hidden

    out_dtype = txt_fts.dtype
    if compute_dtype is not None:
        if txt_fts.dtype != compute_dtype:
            txt_fts = txt_fts.astype(compute_dtype)
        if w1.dtype != compute_dtype:
            w1 = w1.astype(compute_dtype)
        if w2.dtype != compute_dtype:
            w2 = w2.astype(compute_dtype)

    # ---- Row tiling ----
    # Keep >= 2 tiles whenever B allows so v7x's two TensorCores both get work;
    # otherwise use a single (sublane-aligned) tile.  Partial last tile is
    # handled by Pallas masking (rows are independent, so garbage in the
    # out-of-bounds read region cannot contaminate valid output rows).
    if B >= 2 * _SUBLANE:
        bm = min(block_rows, _round_up(-(-B // 2), _SUBLANE))
    else:
        bm = _round_up(max(B, 1), _SUBLANE)
    bm = max(bm, _SUBLANE)
    # Keep double-buffered x/out tiles (+ intermediates) comfortably inside
    # v7x's 64 MiB VMEM / 32 MiB default scoped limit.
    bm = min(bm, 8192)

    grid = (pl.cdiv(B, bm),)

    itemsize_in = jnp.dtype(txt_fts.dtype).itemsize
    itemsize_w = jnp.dtype(w1.dtype).itemsize
    itemsize_out = jnp.dtype(out_dtype).itemsize
    cost = pl.CostEstimate(
        flops=2 * B * (dim_txt * hidden + hidden * dim_vis),
        transcendentals=0,
        bytes_accessed=(B * dim_txt * itemsize_in
                        + (dim_txt * hidden + hidden * dim_vis) * itemsize_w
                        + B * dim_vis * itemsize_out),
    )

    out = pl.pallas_call(
        _de_mlp_kernel,
        out_shape=jax.ShapeDtypeStruct((B, dim_vis), out_dtype),
        grid=grid,
        in_specs=[
            # Streamed row tile of activations (full, unpadded feature width).
            pl.BlockSpec((bm, dim_txt), lambda i: (i, 0)),
            # Weights: constant block index -> VMEM-resident across the grid.
            pl.BlockSpec((dim_txt, hidden), lambda i: (0, 0)),
            pl.BlockSpec((hidden, dim_vis), lambda i: (0, 0)),
        ],
        out_specs=pl.BlockSpec((bm, dim_vis), lambda i: (i, 0)),
        compiler_params=pltpu.CompilerParams(
            # Independent row tiles: shard across TensorCores (v7x megacore).
            # On single-TC v5e/v6e this is a plain sequential loop (no cost).
            dimension_semantics=("parallel",)),
        cost_estimate=cost,
    )(txt_fts, w1, w2)

    return out


if __name__ == "__main__":
    # Config implied by DEModel.__init__: dim_txt_ft, hidden_size, dim_vis_ft.
    # Batch is sized so the row-tiled grid has multiple (>= 2) steps.
    B, DIM_TXT, HIDDEN, DIM_VIS = 1024, 64, 32, 64

    key = jax.random.PRNGKey(0)
    kx, k1, k2 = jax.random.split(key, 3)

    txt_fts = jax.random.normal(kx, (B, DIM_TXT), dtype=jnp.float32)
    # Deterministic "checkpoint": normal init, stored pre-transposed (in, out).
    w1 = (jax.random.normal(k1, (DIM_TXT, HIDDEN), dtype=jnp.float32)
          * (1.0 / jnp.sqrt(DIM_TXT)))
    w2 = (jax.random.normal(k2, (HIDDEN, DIM_VIS), dtype=jnp.float32)
          * (1.0 / jnp.sqrt(HIDDEN)))

    out = de_model_forward(txt_fts, w1, w2)
    out = jax.block_until_ready(out)

    # Sanity check against a plain-JAX reference of the same forward pass.
    ref = jnp.maximum(jnp.maximum(txt_fts @ w1, 0.0) @ w2, 0.0)
    assert out.shape == (B, DIM_VIS)
    assert jnp.allclose(out, ref, atol=1e-5, rtol=1e-5)

    print("KERNEL_OK")
</pallas_src>

<mosaic_0001>
module attributes {stable_mosaic.version = 11 : i64} {
  func.func @_de_mlp_kernel(%arg0: i32, %arg1: memref<512x64xf32, #tpu.memory_space<vmem>>, %arg2: memref<64x32xf32, #tpu.memory_space<vmem>>, %arg3: memref<32x64xf32, #tpu.memory_space<vmem>>, %arg4: memref<512x64xf32, #tpu.memory_space<vmem>>) attributes {dimension_semantics = [#tpu.dimension_semantics<parallel>], iteration_bounds = array<i64: 2>, scalar_prefetch = 0 : i64, scratch_operands = 0 : i64, tpu.core_type = #tpu.core_type<tc>, window_params = [{transform_indices = @transform_0, window_bounds = array<i64: 512, 64>}, {pipeline_mode = #tpu.pipeline_mode<synchronous>, transform_indices = @transform_1, window_bounds = array<i64: 64, 32>}, {pipeline_mode = #tpu.pipeline_mode<synchronous>, transform_indices = @transform_2, window_bounds = array<i64: 32, 64>}, {transform_indices = @transform_3, window_bounds = array<i64: 512, 64>}]} {
    %c0 = arith.constant 0 : index
    %c0_0 = arith.constant 0 : index
    %0 = vector.load %arg1[%c0, %c0_0] : memref<512x64xf32, #tpu.memory_space<vmem>>, vector<512x64xf32>
    %c0_1 = arith.constant 0 : index
    %c0_2 = arith.constant 0 : index
    %1 = vector.load %arg2[%c0_1, %c0_2] : memref<64x32xf32, #tpu.memory_space<vmem>>, vector<64x32xf32>
    %cst = arith.constant dense<0.000000e+00> : vector<512x32xf32>
    %2 = tpu.matmul %0, %1, %cst {dimension_numbers = #tpu.dot_dimension_numbers<[1], [0], [0], [1], [0, 0, 1, 1], [], []>} : vector<512x64xf32>, vector<64x32xf32>, vector<512x32xf32> -> vector<512x32xf32>
    %cst_3 = arith.constant 0.000000e+00 : f32
    %3 = vector.broadcast %cst_3 : f32 to vector<512x32xf32>
    %4 = arith.maximumf %2, %3 : vector<512x32xf32>
    %c0_4 = arith.constant 0 : index
    %c0_5 = arith.constant 0 : index
    %5 = vector.load %arg3[%c0_4, %c0_5] : memref<32x64xf32, #tpu.memory_space<vmem>>, vector<32x64xf32>
    %cst_6 = arith.constant dense<0.000000e+00> : vector<512x64xf32>
    %6 = tpu.matmul %4, %5, %cst_6 {dimension_numbers = #tpu.dot_dimension_numbers<[1], [0], [0], [1], [0, 0, 1, 1], [], []>} : vector<512x32xf32>, vector<32x64xf32>, vector<512x64xf32> -> vector<512x64xf32>
    %cst_7 = arith.constant 0.000000e+00 : f32
    %7 = vector.broadcast %cst_7 : f32 to vector<512x64xf32>
    %8 = arith.maximumf %6, %7 : vector<512x64xf32>
    %c0_8 = arith.constant 0 : index
    %c0_9 = arith.constant 0 : index
    %9 = vector.load %arg4[%c0_8, %c0_9] : memref<512x64xf32, #tpu.memory_space<vmem>>, vector<512x64xf32>
    tpu.vector_store %arg4[%c0_8, %c0_9], %8 {strides = array<i32>} : memref<512x64xf32, #tpu.memory_space<vmem>>, vector<512x64xf32>,
    return
  }
  func.func @transform_0(%arg0: i32) -> (i32, i32) {
    %c0_i32 = arith.constant 0 : i32
    %c0_i32_0 = arith.constant 0 : i32
    return %arg0, %c0_i32 : i32, i32
  }
  func.func @transform_1(%arg0: i32) -> (i32, i32) {
    %c0_i32 = arith.constant 0 : i32
    %c0_i32_0 = arith.constant 0 : i32
    %c0_i32_1 = arith.constant 0 : i32
    return %c0_i32, %c0_i32_0 : i32, i32
  }
  func.func @transform_2(%arg0: i32) -> (i32, i32) {
    %c0_i32 = arith.constant 0 : i32
    %c0_i32_0 = arith.constant 0 : i32
    %c0_i32_1 = arith.constant 0 : i32
    return %c0_i32, %c0_i32_0 : i32, i32
  }
  func.func @transform_3(%arg0: i32) -> (i32, i32) {
    %c0_i32 = arith.constant 0 : i32
    %c0_i32_0 = arith.constant 0 : i32
    return %arg0, %c0_i32 : i32, i32
  }
}

</mosaic_0001>

<bundles_post_ra>
// kernel: tpu_custom_call.1
= control target key start
LH: loop header
LB: loop body
LE: loop exit
PB: predicated region body
PF: predicated region fallthrough
CT: control target
= control target key end

     0   :  { %s2209_s12 = smov 0   ;;  %s2593_s0 = inlined_call_operand.vmem [shape: f32[1024,64], index: 0, kind: input, shape index: {}]   ;;  %s2594_s1 = inlined_call_operand.vmem [shape: f32[64,32], index: 1, kind: input, shape index: {}]   ;;  %s2595_s2 = inlined_call_operand.vmem [shape: f32[32,64], index: 2, kind: input, shape index: {}]   ;;  %s2596_s3 = inlined_call_operand.vmem [shape: f32[1024,64], index: 3, kind: output, shape index: {}]  }
   0x1 LB: > { %s1654_s13 = sadd.s32 4294967295, %s2187_s12   ;;  %p1658_p0 = scmp.ge.s32.totalorder %s2187_s12, 1  ;;  %s2187_s12 = sphi %s2209_s12, %s13_s12  }
   0x2   : > { %p138_p1 = scmp.lt.s32.totalorder %s2187_s12, 3 }
   0x4   : > { %p139_p2 = pnand %p1658_p0, %p138_p1 }
   0x5   : > { %v238_v0 = vld [vmem:[%s2594_s1] sm:$0xff] (!%p139_p2)  ;;  %v239_v1 = vld [vmem:[%s2594_s1 + $0x8] sm:$0xff] (!%p139_p2)  ;;  %v240_v2 = vld [vmem:[%s2594_s1 + $0x10] sm:$0xff] (!%p139_p2)  ;;  %s1659_s20 = sshll.u32 (!%p139_p2), %s1654_s13, 6  ;;  %vm246_vm0 = vcmask (!%p139_p2), 523264   ;;  %vm892_vm1 = vcmask (!%p139_p2), 261120  }
   0x6   : > { %142 = sbr.rel (%p139_p2) target bundleno = 580 (0x244), region = 32  ;;  %v2149_v3 = vpack.c.bf16 (!%p139_p2), %v239_v1, %v238_v0  ;;  %v241_v4 = vld [vmem:[%s2594_s1 + $0x18] sm:$0xff] (!%p139_p2)  ;;  %p163_p3 = scmp.lt.s32.totalorder (!%p139_p2), %s1659_s20, 127  ;;  %v242_v6 = vld [vmem:[%s2594_s1 + $0x20] sm:$0xff] (!%p139_p2)  ;;  %v243_v7 = vld [vmem:[%s2594_s1 + $0x28] sm:$0xff] (!%p139_p2) }
   0x7   : > { %v2153_v5 = vpack.c.bf16 (!%p139_p2), %v241_v4, %v240_v2  ;;  %v2157_v8 = vpack.c.bf16 (!%p139_p2), %v243_v7, %v242_v6  ;;  %v244_v9 = vld [vmem:[%s2594_s1 + $0x30] sm:$0xff] (!%p139_p2)  ;;  %v245_v10 = vld [vmem:[%s2594_s1 + $0x38] sm:$0xff] (!%p139_p2)  ;;  %v888_v20 = vld [vmem:[%s2595_s2] sm:$0xff] (!%p139_p2) }
   0x8   : > { %2150 = vmatprep.subr.bf16.mxu0 (!%p139_p2), %v2149_v3  ;;  %v2161_v12 = vpack.c.bf16 (!%p139_p2), %v245_v10, %v244_v9  ;;  %v889_v21 = vld [vmem:[%s2595_s2 + $0x8] sm:$0xff] (!%p139_p2)  ;;  %v890_v59 = vld [vmem:[%s2595_s2 + $0x10] sm:$0xff] (!%p139_p2)  ;;  %v891_v60 = vld [vmem:[%s2595_s2 + $0x18] sm:$0xff] (!%p139_p2) }
   0x9   : > { %2152 = vmatpush3.bf16.msra.mxu0 (!%p139_p2), %v2149_v3  ;;  %v2165_v23 = vpack.c.bf16 (!%p139_p2), %v889_v21, %v888_v20  ;;  %v2169_v62 = vpack.c.bf16 (!%p139_p2), %v891_v60, %v890_v59 }
   0xa   : > { %2154 = vmatprep.subr.bf16.mxu0 (!%p139_p2), %v2153_v5 }
   0xb   : > { %2166 = vmatprep.subr.bf16.mxu1 (!%p139_p2), %v2165_v23 }
   0xc   : > { %2168 = vmatpush3.bf16.msra.mxu1 (!%p139_p2), %v2165_v23 }
   0xd   : > { %s2598_s20 = smov (!%p163_p3, %s1659_s20), 127  ;;  %2156 = vmatpush3.bf16.msra.mxu0 %v2153_v5  ;;  %2170 = vmatprep.subr.bf16.mxu1 %v2169_v62 }
   0xe   : > { %s1660_s27 = sshll.u32 %s2598_s20, 3  ;;  %2158 = vmatprep.subr.bf16.mxu0 %v2157_v8 }
   0xf   : > { %s2249_s7 = scalar_lea.vmem %s2593_s0, %s1660_s27  ;;  %s2460_s19 = scalar_lea.vmem %s2596_s3, %s1660_s27 }
  0x10   : > { %v174_v11 = vld [vmem:[%s2249_s7] sm:$0xff]  ;;  %v175_v13 = vld [vmem:[%s2249_s7 + $0x8] sm:$0xff]  ;;  %v176_v14 = vld [vmem:[%s2249_s7 + $0x10] sm:$0xff]  ;;  %2172 = vmatpush3.bf16.msra.mxu1 %v2169_v62 }
  0x11   : > { %1949 = vmatprep.mubr.msk.f32.mxu0 %vm246_vm0, %v174_v11  ;;  %2160 = vmatpush3.bf16.msra.mxu0 %v2157_v8  ;;  %v177_v15 = vld [vmem:[%s2249_s7 + $0x18] sm:$0xff]  ;;  %v178_v16 = vld [vmem:[%s2249_s7 + $0x20] sm:$0xff]  ;;  %v179_v17 = vld [vmem:[%s2249_s7 + $0x28] sm:$0xff] }
  0x12   : > { %2162 = vmatprep.subr.bf16.mxu0 %v2161_v12  ;;  %v180_v18 = vld [vmem:[%s2249_s7 + $0x30] sm:$0xff]  ;;  %v181_v19 = vld [vmem:[%s2249_s7 + $0x38] sm:$0xff]  ;;  %v182_v22 = vld [vmem:[%s2249_s7 + $0x40] sm:$0xff] }
  0x13   : > { %v183_v24 = vld [vmem:[%s2249_s7 + $0x48] sm:$0xff]  ;;  %v184_v25 = vld [vmem:[%s2249_s7 + $0x50] sm:$0xff]  ;;  %v185_v26 = vld [vmem:[%s2249_s7 + $0x58] sm:$0xff] }
  0x14   : > { %v186_v27 = vld [vmem:[%s2249_s7 + $0x60] sm:$0xff]  ;;  %v187_v28 = vld [vmem:[%s2249_s7 + $0x68] sm:$0xff]  ;;  %v188_v29 = vld [vmem:[%s2249_s7 + $0x70] sm:$0xff] }
  0x15   : > { %2164 = vmatpush3.bf16.msra.mxu0 %v2161_v12  ;;  %v189_v30 = vld [vmem:[%s2249_s7 + $0x78] sm:$0xff]  ;;  %v190_v31 = vld [vmem:[%s2249_s7 + $0x80] sm:$0xff]  ;;  %v191_v32 = vld [vmem:[%s2249_s7 + $0x88] sm:$0xff] }
  0x16   : > { %v192_v33 = vld [vmem:[%s2249_s7 + $0x90] sm:$0xff]  ;;  %v193_v34 = vld [vmem:[%s2249_s7 + $0x98] sm:$0xff]  ;;  %v194_v35 = vld [vmem:[%s2249_s7 + $0xa0] sm:$0xff] }
  0x17   : > { %v195_v36 = vld [vmem:[%s2249_s7 + $0xa8] sm:$0xff]  ;;  %v196_v37 = vld [vmem:[%s2249_s7 + $0xb0] sm:$0xff]  ;;  %v197_v38 = vld [vmem:[%s2249_s7 + $0xb8] sm:$0xff] }
  0x18   : > { %1950 = vmatmul.mubr.msk.f32.vlgmr.msra.gmra.mrb[0].mxu0 %vm246_vm0, %v175_v13  ;;  %v198_v39 = vld [vmem:[%s2249_s7 + $0xc0] sm:$0xff]  ;;  %v199_v40 = vld [vmem:[%s2249_s7 + $0xc8] sm:$0xff]  ;;  %v200_v41 = vld [vmem:[%s2249_s7 + $0xd0] sm:$0xff] }
  0x19   : > { %1952 = vmatprep.mubr.msk.f32.mxu0 %vm246_vm0, %v176_v14  ;;  %v201_v42 = vld [vmem:[%s2249_s7 + $0xd8] sm:$0xff]  ;;  %v202_v43 = vld [vmem:[%s2249_s7 + $0xe0] sm:$0xff]  ;;  %v203_v44 = vld [vmem:[%s2249_s7 + $0xe8] sm:$0xff] }
  0x1a   : > { %v204_v45 = vld [vmem:[%s2249_s7 + $0xf0] sm:$0xff]  ;;  %v205_v46 = vld [vmem:[%s2249_s7 + $0xf8] sm:$0xff]  ;;  %v206_v47 = vld [vmem:[%s2249_s7 + $0x100] sm:$0xff] }
  0x1b   : > { %v207_v48 = vld [vmem:[%s2249_s7 + $0x108] sm:$0xff]  ;;  %v208_v49 = vld [vmem:[%s2249_s7 + $0x110] sm:$0xff]  ;;  %v209_v50 = vld [vmem:[%s2249_s7 + $0x118] sm:$0xff] }
  0x1c   : > { %1953 = vmatmul.mubr.msk.f32.gmra.mrb[2].mxu0 %vm246_vm0, %v177_v15  ;;  %v210_v51 = vld [vmem:[%s2249_s7 + $0x120] sm:$0xff]  ;;  %v211_v52 = vld [vmem:[%s2249_s7 + $0x128] sm:$0xff]  ;;  %v212_v53 = vld [vmem:[%s2249_s7 + $0x130] sm:$0xff] }
  0x1d   : > { %1955 = vmatprep.mubr.msk.f32.mxu0 %vm246_vm0, %v178_v16  ;;  %v213_v54 = vld [vmem:[%s2249_s7 + $0x138] sm:$0xff]  ;;  %v214_v55 = vld [vmem:[%s2249_s7 + $0x140] sm:$0xff]  ;;  %v215_v56 = vld [vmem:[%s2249_s7 + $0x148] sm:$0xff] }
  0x1e   : > { %v216_v57 = vld [vmem:[%s2249_s7 + $0x150] sm:$0xff]  ;;  %v217_v58 = vld [vmem:[%s2249_s7 + $0x158] sm:$0xff]  ;;  %v218_v61 = vld [vmem:[%s2249_s7 + $0x160] sm:$0xff] }
  0x1f   : > { %v219_v63 = vld [vmem:[%s2249_s7 + $0x168] sm:$0xff]  ;;  %v220_v0 = vld [vmem:[%s2249_s7 + $0x170] sm:$0xff]  ;;  %v221_v1 = vld [vmem:[%s2249_s7 + $0x178] sm:$0xff] }
  0x20   : > { %1956 = vmatmul.mubr.msk.f32.gmra.mrb[4].mxu0 %vm246_vm0, %v179_v17  ;;  %v222_v2 = vld [vmem:[%s2249_s7 + $0x180] sm:$0xff]  ;;  %v223_v3 = vld [vmem:[%s2249_s7 + $0x188] sm:$0xff]  ;;  %v224_v4 = vld [vmem:[%s2249_s7 + $0x190] sm:$0xff] }
  0x21   : > { %1958 = vmatprep.mubr.msk.f32.mxu0 %vm246_vm0, %v180_v18  ;;  %v225_v5 = vld [vmem:[%s2249_s7 + $0x198] sm:$0xff]  ;;  %v226_v6 = vld [vmem:[%s2249_s7 + $0x1a0] sm:$0xff]  ;;  %v227_v7 = vld [vmem:[%s2249_s7 + $0x1a8] sm:$0xff] }
  0x22   : > { %v228_v8 = vld [vmem:[%s2249_s7 + $0x1b0] sm:$0xff]  ;;  %v229_v9 = vld [vmem:[%s2249_s7 + $0x1b8] sm:$0xff]  ;;  %v230_v10 = vld [vmem:[%s2249_s7 + $0x1c0] sm:$0xff] }
  0x23   : > { %v231_v11 = vld [vmem:[%s2249_s7 + $0x1c8] sm:$0xff]  ;;  %v232_v12 = vld [vmem:[%s2249_s7 + $0x1d0] sm:$0xff]  ;;  %v233_v13 = vld [vmem:[%s2249_s7 + $0x1d8] sm:$0xff] }
  0x24   : > { %1959 = vmatmul.mubr.msk.f32.gmra.mrb[6].mxu0 %vm246_vm0, %v181_v19  ;;  %v234_v14 = vld [vmem:[%s2249_s7 + $0x1e0] sm:$0xff]  ;;  %v235_v15 = vld [vmem:[%s2249_s7 + $0x1e8] sm:$0xff]  ;;  %v236_v16 = vld [vmem:[%s2249_s7 + $0x1f0] sm:$0xff] }
  0x25   : > { %1961 = vmatprep.mubr.msk.f32.mxu0 %vm246_vm0, %v182_v22  ;;  %v237_v17 = vld [vmem:[%s2249_s7 + $0x1f8] sm:$0xff] }
  0x28   : > { %1962 = vmatmul.mubr.msk.f32.gmra.mrb[8].mxu0 %vm246_vm0, %v183_v24 }
  0x29   : > { %1964 = vmatprep.mubr.msk.f32.mxu0 %vm246_vm0, %v184_v25 }
  0x2c   : > { %1965 = vmatmul.mubr.msk.f32.gmra.mrb[10].mxu0 %vm246_vm0, %v185_v26 }
  0x2d   : > { %1967 = vmatprep.mubr.msk.f32.mxu0 %vm246_vm0, %v186_v27 }
  0x30   : > { %1968 = vmatmul.mubr.msk.f32.gmra.mrb[12].mxu0 %vm246_vm0, %v187_v28 }
  0x31   : > { %1970 = vmatprep.mubr.msk.f32.mxu0 %vm246_vm0, %v188_v29 }
  0x34   : > { %1971 = vmatmul.mubr.msk.f32.gmra.mrb[14].mxu0 %vm246_vm0, %v189_v30 }
  0x35   : > { %1973 = vmatprep.mubr.msk.f32.mxu0 %vm246_vm0, %v190_v31 }
  0x38   : > { %1974 = vmatmul.mubr.msk.f32.gmra.mrb[16].mxu0 %vm246_vm0, %v191_v32 }
  0x39   : > { %1976 = vmatprep.mubr.msk.f32.mxu0 %vm246_vm0, %v192_v33 }
  0x3c   : > { %1977 = vmatmul.mubr.msk.f32.gmra.mrb[18].mxu0 %vm246_vm0, %v193_v34 }
  0x3d   : > { %1979 = vmatprep.mubr.msk.f32.mxu0 %vm246_vm0, %v194_v35 }
  0x40   : > { %1980 = vmatmul.mubr.msk.f32.gmra.mrb[20].mxu0 %vm246_vm0, %v195_v36 }
  0x41   : > { %1982 = vmatprep.mubr.msk.f32.mxu0 %vm246_vm0, %v196_v37 }
  0x44   : > { %1983 = vmatmul.mubr.msk.f32.gmra.mrb[22].mxu0 %vm246_vm0, %v197_v38 }
  0x45   : > { %1985 = vmatprep.mubr.msk.f32.mxu0 %vm246_vm0, %v198_v39 }
  0x48   : > { %1986 = vmatmul.mubr.msk.f32.gmra.mrb[24].mxu0 %vm246_vm0, %v199_v40 }
  0x49   : > { %1988 = vmatprep.mubr.msk.f32.mxu0 %vm246_vm0, %v200_v41 }
  0x4c   : > { %1989 = vmatmul.mubr.msk.f32.gmra.mrb[26].mxu0 %vm246_vm0, %v201_v42 }
  0x4d   : > { %1991 = vmatprep.mubr.msk.f32.mxu0 %vm246_vm0, %v202_v43 }
  0x50   : > { %1992 = vmatmul.mubr.msk.f32.gmra.mrb[28].mxu0 %vm246_vm0, %v203_v44 }
  0x51   : > { %1994 = vmatprep.mubr.msk.f32.mxu0 %vm246_vm0, %v204_v45 }
  0x54   : > { %1995 = vmatmul.mubr.msk.f32.gmra.mrb[30].mxu0 %vm246_vm0, %v205_v46 }
  0x55   : > { %1997 = vmatprep.mubr.msk.f32.mxu0 %vm246_vm0, %v206_v47 }
  0x58   : > { %1998 = vmatmul.mubr.msk.f32.gmra.mrb[32].mxu0 %vm246_vm0, %v207_v48 }
  0x59   : > { %2000 = vmatprep.mubr.msk.f32.mxu0 %vm246_vm0, %v208_v49 }
  0x5c   : > { %2001 = vmatmul.mubr.msk.f32.gmra.mrb[34].mxu0 %vm246_vm0, %v209_v50 }
  0x5d   : > { %2003 = vmatprep.mubr.msk.f32.mxu0 %vm246_vm0, %v210_v51 }
  0x60   : > { %2004 = vmatmul.mubr.msk.f32.gmra.mrb[36].mxu0 %vm246_vm0, %v211_v52 }
  0x61   : > { %2006 = vmatprep.mubr.msk.f32.mxu0 %vm246_vm0, %v212_v53 }
  0x64   : > { %2007 = vmatmul.mubr.msk.f32.gmra.mrb[38].mxu0 %vm246_vm0, %v213_v54 }
  0x65   : > { %2009 = vmatprep.mubr.msk.f32.mxu0 %vm246_vm0, %v214_v55 }
  0x68   : > { %2010 = vmatmul.mubr.msk.f32.gmra.mrb[40].mxu0 %vm246_vm0, %v215_v56 }
  0x69   : > { %2012 = vmatprep.mubr.msk.f32.mxu0 %vm246_vm0, %v216_v57 }
  0x6c   : > { %2013 = vmatmul.mubr.msk.f32.gmra.mrb[42].mxu0 %vm246_vm0, %v217_v58 }
  0x6d   : > { %2015 = vmatprep.mubr.msk.f32.mxu0 %vm246_vm0, %v218_v61 }
  0x70   : > { %2016 = vmatmul.mubr.msk.f32.gmra.mrb[44].mxu0 %vm246_vm0, %v219_v63 }
  0x71   : > { %2018 = vmatprep.mubr.msk.f32.mxu0 %vm246_vm0, %v220_v0 }
  0x74   : > { %2019 = vmatmul.mubr.msk.f32.gmra.mrb[46].mxu0 %vm246_vm0, %v221_v1 }
  0x75   : > { %2021 = vmatprep.mubr.msk.f32.mxu0 %vm246_vm0, %v222_v2 }
  0x78   : > { %2022 = vmatmul.mubr.msk.f32.gmra.mrb[48].mxu0 %vm246_vm0, %v223_v3 }
  0x79   : > { %2024 = vmatprep.mubr.msk.f32.mxu0 %vm246_vm0, %v224_v4 }
  0x7c   : > { %2025 = vmatmul.mubr.msk.f32.gmra.mrb[50].mxu0 %vm246_vm0, %v225_v5 }
  0x7d   : > { %2027 = vmatprep.mubr.msk.f32.mxu0 %vm246_vm0, %v226_v6 }
  0x80   : > { %2028 = vmatmul.mubr.msk.f32.gmra.mrb[52].mxu0 %vm246_vm0, %v227_v7 }
  0x81   : > { %2030 = vmatprep.mubr.msk.f32.mxu0 %vm246_vm0, %v228_v8 }
  0x84   : > { %2031 = vmatmul.mubr.msk.f32.gmra.mrb[54].mxu0 %vm246_vm0, %v229_v9 }
  0x85   : > { %2033 = vmatprep.mubr.msk.f32.mxu0 %vm246_vm0, %v230_v10 }
  0x88   : > { %2034 = vmatmul.mubr.msk.f32.gmra.mrb[56].mxu0 %vm246_vm0, %v231_v11 }
  0x89   : > { %2036 = vmatprep.mubr.msk.f32.mxu0 %vm246_vm0, %v232_v12 }
  0x8c   : > { %2037 = vmatmul.mubr.msk.f32.gmra.mrb[58].mxu0 %vm246_vm0, %v233_v13 }
  0x8d   : > { %2039 = vmatprep.mubr.msk.f32.mxu0 %vm246_vm0, %v234_v14 }
  0x90   : > { %2040 = vmatmul.mubr.msk.f32.gmra.mrb[60].mxu0 %vm246_vm0, %v235_v15 }
  0x91   : > { %2042 = vmatprep.mubr.msk.f32.mxu0 %vm246_vm0, %v236_v16 }
  0x94   : > { %2043 = vmatmul.mubr.msk.f32.gmra.mrb[62].mxu0 %vm246_vm0, %v237_v17 }
  0xeb   : > { %v1951_v18 = vpop.f32.mrb[0].mxu0 }
  0xec   : > { %v505_v19 = vpop.f32.mrb[1].mxu0  ;;  %v825_v21 = vmax.f32 %v1951_v18, 0.0 }
  0xed   : > { %v824_v20 = vmax.f32 %v505_v19, 0.0 }
  0xef   : > { %v1954_v22 = vpop.f32.mrb[2].mxu0  ;;  %2053 = vmatprep.mubr.msk.f32.mxu1 %vm892_vm1, %v824_v20 }
  0xf0   : > { %v515_v23 = vpop.f32.mrb[3].mxu0  ;;  %2054 = vmatmul.mubr.msk.f32.vlgmr.msra.gmra.mrb[0].mxu1 %vm892_vm1, %v825_v21  ;;  %v827_v25 = vmax.f32 %v1954_v22, 0.0 }
  0xf1   : > { %v826_v24 = vmax.f32 %v515_v23, 0.0 }
  0xf3   : > { %v1957_v26 = vpop.f32.mrb[4].mxu0  ;;  %2056 = vmatprep.mubr.msk.f32.mxu1 %vm892_vm1, %v826_v24 }
  0xf4   : > { %v525_v27 = vpop.f32.mrb[5].mxu0  ;;  %2057 = vmatmul.mubr.msk.f32.gmra.mrb[2].mxu1 %vm892_vm1, %v827_v25  ;;  %v829_v29 = vmax.f32 %v1957_v26, 0.0 }
  0xf5   : > { %v828_v28 = vmax.f32 %v525_v27, 0.0 }
  0xf7   : > { %v1960_v30 = vpop.f32.mrb[6].mxu0  ;;  %2059 = vmatprep.mubr.msk.f32.mxu1 %vm892_vm1, %v828_v28 }
  0xf8   : > { %v535_v31 = vpop.f32.mrb[7].mxu0  ;;  %2060 = vmatmul.mubr.msk.f32.gmra.mrb[4].mxu1 %vm892_vm1, %v829_v29  ;;  %v831_v33 = vmax.f32 %v1960_v30, 0.0 }
  0xf9   : > { %v830_v32 = vmax.f32 %v535_v31, 0.0 }
  0xfb   : > { %v1963_v34 = vpop.f32.mrb[8].mxu0  ;;  %2062 = vmatprep.mubr.msk.f32.mxu1 %vm892_vm1, %v830_v32 }
  0xfc   : > { %v545_v35 = vpop.f32.mrb[9].mxu0  ;;  %2063 = vmatmul.mubr.msk.f32.gmra.mrb[6].mxu1 %vm892_vm1, %v831_v33  ;;  %v833_v37 = vmax.f32 %v1963_v34, 0.0 }
  0xfd   : > { %v832_v36 = vmax.f32 %v545_v35, 0.0 }
  0xff   : > { %v1966_v38 = vpop.f32.mrb[10].mxu0  ;;  %2065 = vmatprep.mubr.msk.f32.mxu1 %vm892_vm1, %v832_v36 }
 0x100   : > { %v555_v39 = vpop.f32.mrb[11].mxu0  ;;  %2066 = vmatmul.mubr.msk.f32.gmra.mrb[8].mxu1 %vm892_vm1, %v833_v37  ;;  %v835_v41 = vmax.f32 %v1966_v38, 0.0 }
 0x101   : > { %v834_v40 = vmax.f32 %v555_v39, 0.0 }
 0x103   : > { %v1969_v42 = vpop.f32.mrb[12].mxu0  ;;  %2068 = vmatprep.mubr.msk.f32.mxu1 %vm892_vm1, %v834_v40 }
 0x104   : > { %v565_v43 = vpop.f32.mrb[13].mxu0  ;;  %2069 = vmatmul.mubr.msk.f32.gmra.mrb[10].mxu1 %vm892_vm1, %v835_v41  ;;  %v837_v45 = vmax.f32 %v1969_v42, 0.0 }
 0x105   : > { %v836_v44 = vmax.f32 %v565_v43, 0.0 }
 0x107   : > { %v1972_v46 = vpop.f32.mrb[14].mxu0  ;;  %2071 = vmatprep.mubr.msk.f32.mxu1 %vm892_vm1, %v836_v44 }
 0x108   : > { %v575_v47 = vpop.f32.mrb[15].mxu0  ;;  %2072 = vmatmul.mubr.msk.f32.gmra.mrb[12].mxu1 %vm892_vm1, %v837_v45  ;;  %v839_v49 = vmax.f32 %v1972_v46, 0.0 }
 0x109   : > { %v838_v48 = vmax.f32 %v575_v47, 0.0 }
 0x10b   : > { %v1975_v50 = vpop.f32.mrb[16].mxu0  ;;  %2074 = vmatprep.mubr.msk.f32.mxu1 %vm892_vm1, %v838_v48 }
 0x10c   : > { %v585_v51 = vpop.f32.mrb[17].mxu0  ;;  %2075 = vmatmul.mubr.msk.f32.gmra.mrb[14].mxu1 %vm892_vm1, %v839_v49  ;;  %v841_v53 = vmax.f32 %v1975_v50, 0.0 }
 0x10d   : > { %v840_v52 = vmax.f32 %v585_v51, 0.0 }
 0x10f   : > { %v1978_v54 = vpop.f32.mrb[18].mxu0  ;;  %2077 = vmatprep.mubr.msk.f32.mxu1 %vm892_vm1, %v840_v52 }
 0x110   : > { %v595_v55 = vpop.f32.mrb[19].mxu0  ;;  %2078 = vmatmul.mubr.msk.f32.gmra.mrb[16].mxu1 %vm892_vm1, %v841_v53  ;;  %v843_v57 = vmax.f32 %v1978_v54, 0.0 }
 0x111   : > { %v842_v56 = vmax.f32 %v595_v55, 0.0 }
 0x113   : > { %v1981_v58 = vpop.f32.mrb[20].mxu0  ;;  %2080 = vmatprep.mubr.msk.f32.mxu1 %vm892_vm1, %v842_v56 }
 0x114   : > { %v605_v59 = vpop.f32.mrb[21].mxu0  ;;  %2081 = vmatmul.mubr.msk.f32.gmra.mrb[18].mxu1 %vm892_vm1, %v843_v57  ;;  %v845_v61 = vmax.f32 %v1981_v58, 0.0 }
 0x115   : > { %v844_v60 = vmax.f32 %v605_v59, 0.0 }
 0x117   : > { %v1984_v62 = vpop.f32.mrb[22].mxu0  ;;  %2083 = vmatprep.mubr.msk.f32.mxu1 %vm892_vm1, %v844_v60 }
 0x118   : > { %v615_v63 = vpop.f32.mrb[23].mxu0  ;;  %2084 = vmatmul.mubr.msk.f32.gmra.mrb[20].mxu1 %vm892_vm1, %v845_v61  ;;  %v847_v1 = vmax.f32 %v1984_v62, 0.0 }
 0x119   : > { %v846_v0 = vmax.f32 %v615_v63, 0.0 }
 0x11b   : > { %v1987_v2 = vpop.f32.mrb[24].mxu0  ;;  %2086 = vmatprep.mubr.msk.f32.mxu1 %vm892_vm1, %v846_v0 }
 0x11c   : > { %v625_v3 = vpop.f32.mrb[25].mxu0  ;;  %2087 = vmatmul.mubr.msk.f32.gmra.mrb[22].mxu1 %vm892_vm1, %v847_v1  ;;  %v849_v5 = vmax.f32 %v1987_v2, 0.0 }
 0x11d   : > { %v848_v4 = vmax.f32 %v625_v3, 0.0 }
 0x11f   : > { %v1990_v6 = vpop.f32.mrb[26].mxu0  ;;  %2089 = vmatprep.mubr.msk.f32.mxu1 %vm892_vm1, %v848_v4 }
 0x120   : > { %v635_v7 = vpop.f32.mrb[27].mxu0  ;;  %2090 = vmatmul.mubr.msk.f32.gmra.mrb[24].mxu1 %vm892_vm1, %v849_v5  ;;  %v851_v9 = vmax.f32 %v1990_v6, 0.0 }
 0x121   : > { %v850_v8 = vmax.f32 %v635_v7, 0.0 }
 0x123   : > { %v1993_v10 = vpop.f32.mrb[28].mxu0  ;;  %2092 = vmatprep.mubr.msk.f32.mxu1 %vm892_vm1, %v850_v8 }
 0x124   : > { %v645_v11 = vpop.f32.mrb[29].mxu0  ;;  %2093 = vmatmul.mubr.msk.f32.gmra.mrb[26].mxu1 %vm892_vm1, %v851_v9  ;;  %v853_v13 = vmax.f32 %v1993_v10, 0.0 }
 0x125   : > { %v852_v12 = vmax.f32 %v645_v11, 0.0 }
 0x127   : > { %v1996_v14 = vpop.f32.mrb[30].mxu0  ;;  %2095 = vmatprep.mubr.msk.f32.mxu1 %vm892_vm1, %v852_v12 }
 0x128   : > { %v655_v15 = vpop.f32.mrb[31].mxu0  ;;  %2096 = vmatmul.mubr.msk.f32.gmra.mrb[28].mxu1 %vm892_vm1, %v853_v13  ;;  %v855_v17 = vmax.f32 %v1996_v14, 0.0 }
 0x129   : > { %v854_v16 = vmax.f32 %v655_v15, 0.0 }
 0x12b   : > { %v1999_v18 = vpop.f32.mrb[32].mxu0  ;;  %2098 = vmatprep.mubr.msk.f32.mxu1 %vm892_vm1, %v854_v16 }
 0x12c   : > { %v665_v19 = vpop.f32.mrb[33].mxu0  ;;  %2099 = vmatmul.mubr.msk.f32.gmra.mrb[30].mxu1 %vm892_vm1, %v855_v17  ;;  %v857_v21 = vmax.f32 %v1999_v18, 0.0 }
 0x12d   : > { %v856_v20 = vmax.f32 %v665_v19, 0.0 }
 0x12f   : > { %v2002_v22 = vpop.f32.mrb[34].mxu0  ;;  %2101 = vmatprep.mubr.msk.f32.mxu1 %vm892_vm1, %v856_v20 }
 0x130   : > { %v675_v23 = vpop.f32.mrb[35].mxu0  ;;  %2102 = vmatmul.mubr.msk.f32.gmra.mrb[32].mxu1 %vm892_vm1, %v857_v21  ;;  %v859_v25 = vmax.f32 %v2002_v22, 0.0 }
 0x131   : > { %v858_v24 = vmax.f32 %v675_v23, 0.0 }
 0x133   : > { %v2005_v26 = vpop.f32.mrb[36].mxu0  ;;  %2104 = vmatprep.mubr.msk.f32.mxu1 %vm892_vm1, %v858_v24 }
 0x134   : > { %v685_v27 = vpop.f32.mrb[37].mxu0  ;;  %2105 = vmatmul.mubr.msk.f32.gmra.mrb[34].mxu1 %vm892_vm1, %v859_v25  ;;  %v861_v29 = vmax.f32 %v2005_v26, 0.0 }
 0x135   : > { %v860_v28 = vmax.f32 %v685_v27, 0.0 }
 0x137   : > { %v2008_v30 = vpop.f32.mrb[38].mxu0  ;;  %2107 = vmatprep.mubr.msk.f32.mxu1 %vm892_vm1, %v860_v28 }
 0x138   : > { %v695_v31 = vpop.f32.mrb[39].mxu0  ;;  %2108 = vmatmul.mubr.msk.f32.gmra.mrb[36].mxu1 %vm892_vm1, %v861_v29  ;;  %v863_v33 = vmax.f32 %v2008_v30, 0.0 }
 0x139   : > { %v862_v32 = vmax.f32 %v695_v31, 0.0 }
 0x13b   : > { %v2011_v34 = vpop.f32.mrb[40].mxu0  ;;  %2110 = vmatprep.mubr.msk.f32.mxu1 %vm892_vm1, %v862_v32 }
 0x13c   : > { %v705_v35 = vpop.f32.mrb[41].mxu0  ;;  %2111 = vmatmul.mubr.msk.f32.gmra.mrb[38].mxu1 %vm892_vm1, %v863_v33  ;;  %v865_v37 = vmax.f32 %v2011_v34, 0.0 }
 0x13d   : > { %v864_v36 = vmax.f32 %v705_v35, 0.0 }
 0x13f   : > { %v2014_v38 = vpop.f32.mrb[42].mxu0  ;;  %2113 = vmatprep.mubr.msk.f32.mxu1 %vm892_vm1, %v864_v36 }
 0x140   : > { %v715_v39 = vpop.f32.mrb[43].mxu0  ;;  %2114 = vmatmul.mubr.msk.f32.gmra.mrb[40].mxu1 %vm892_vm1, %v865_v37  ;;  %v867_v41 = vmax.f32 %v2014_v38, 0.0 }
 0x141   : > { %v866_v40 = vmax.f32 %v715_v39, 0.0 }
 0x143   : > { %v2017_v42 = vpop.f32.mrb[44].mxu0  ;;  %2116 = vmatprep.mubr.msk.f32.mxu1 %vm892_vm1, %v866_v40 }
 0x144   : > { %v725_v43 = vpop.f32.mrb[45].mxu0  ;;  %2117 = vmatmul.mubr.msk.f32.gmra.mrb[42].mxu1 %vm892_vm1, %v867_v41  ;;  %v869_v45 = vmax.f32 %v2017_v42, 0.0 }
 0x145   : > { %v868_v44 = vmax.f32 %v725_v43, 0.0 }
 0x147   : > { %v2020_v46 = vpop.f32.mrb[46].mxu0  ;;  %2119 = vmatprep.mubr.msk.f32.mxu1 %vm892_vm1, %v868_v44 }
 0x148   : > { %v735_v47 = vpop.f32.mrb[47].mxu0  ;;  %2120 = vmatmul.mubr.msk.f32.gmra.mrb[44].mxu1 %vm892_vm1, %v869_v45  ;;  %v871_v49 = vmax.f32 %v2020_v46, 0.0 }
 0x149   : > { %v870_v48 = vmax.f32 %v735_v47, 0.0 }
 0x14b   : > { %v2023_v50 = vpop.f32.mrb[48].mxu0  ;;  %2122 = vmatprep.mubr.msk.f32.mxu1 %vm892_vm1, %v870_v48 }
 0x14c   : > { %v745_v51 = vpop.f32.mrb[49].mxu0  ;;  %2123 = vmatmul.mubr.msk.f32.gmra.mrb[46].mxu1 %vm892_vm1, %v871_v49  ;;  %v873_v53 = vmax.f32 %v2023_v50, 0.0 }
 0x14d   : > { %v872_v52 = vmax.f32 %v745_v51, 0.0 }
 0x14f   : > { %v2026_v54 = vpop.f32.mrb[50].mxu0  ;;  %2125 = vmatprep.mubr.msk.f32.mxu1 %vm892_vm1, %v872_v52 }
 0x150   : > { %v755_v55 = vpop.f32.mrb[51].mxu0  ;;  %2126 = vmatmul.mubr.msk.f32.gmra.mrb[48].mxu1 %vm892_vm1, %v873_v53  ;;  %v875_v57 = vmax.f32 %v2026_v54, 0.0 }
 0x151   : > { %v874_v56 = vmax.f32 %v755_v55, 0.0 }
 0x153   : > { %v2029_v58 = vpop.f32.mrb[52].mxu0  ;;  %2128 = vmatprep.mubr.msk.f32.mxu1 %vm892_vm1, %v874_v56 }
 0x154   : > { %v765_v59 = vpop.f32.mrb[53].mxu0  ;;  %2129 = vmatmul.mubr.msk.f32.gmra.mrb[50].mxu1 %vm892_vm1, %v875_v57  ;;  %v877_v61 = vmax.f32 %v2029_v58, 0.0 }
 0x155   : > { %v876_v60 = vmax.f32 %v765_v59, 0.0 }
 0x157   : > { %v2032_v62 = vpop.f32.mrb[54].mxu0  ;;  %2131 = vmatprep.mubr.msk.f32.mxu1 %vm892_vm1, %v876_v60 }
 0x158   : > { %v775_v63 = vpop.f32.mrb[55].mxu0  ;;  %2132 = vmatmul.mubr.msk.f32.gmra.mrb[52].mxu1 %vm892_vm1, %v877_v61  ;;  %v879_v1 = vmax.f32 %v2032_v62, 0.0 }
 0x159   : > { %v878_v0 = vmax.f32 %v775_v63, 0.0 }
 0x15b   : > { %v2035_v2 = vpop.f32.mrb[56].mxu0  ;;  %2134 = vmatprep.mubr.msk.f32.mxu1 %vm892_vm1, %v878_v0 }
 0x15c   : > { %v785_v3 = vpop.f32.mrb[57].mxu0  ;;  %2135 = vmatmul.mubr.msk.f32.gmra.mrb[54].mxu1 %vm892_vm1, %v879_v1  ;;  %v881_v5 = vmax.f32 %v2035_v2, 0.0 }
 0x15d   : > { %v880_v4 = vmax.f32 %v785_v3, 0.0 }
 0x15f   : > { %v2038_v6 = vpop.f32.mrb[58].mxu0  ;;  %2137 = vmatprep.mubr.msk.f32.mxu1 %vm892_vm1, %v880_v4 }
 0x160   : > { %v795_v7 = vpop.f32.mrb[59].mxu0  ;;  %2138 = vmatmul.mubr.msk.f32.gmra.mrb[56].mxu1 %vm892_vm1, %v881_v5  ;;  %v883_v9 = vmax.f32 %v2038_v6, 0.0 }
 0x161   : > { %v882_v8 = vmax.f32 %v795_v7, 0.0 }
 0x163   : > { %v2041_v10 = vpop.f32.mrb[60].mxu0  ;;  %2140 = vmatprep.mubr.msk.f32.mxu1 %vm892_vm1, %v882_v8 }
 0x164   : > { %v805_v11 = vpop.f32.mrb[61].mxu0  ;;  %2141 = vmatmul.mubr.msk.f32.gmra.mrb[58].mxu1 %vm892_vm1, %v883_v9  ;;  %v885_v13 = vmax.f32 %v2041_v10, 0.0 }
 0x165   : > { %v884_v12 = vmax.f32 %v805_v11, 0.0 }
 0x167   : > { %v2044_v14 = vpop.f32.mrb[62].mxu0  ;;  %2143 = vmatprep.mubr.msk.f32.mxu1 %vm892_vm1, %v884_v12 }
 0x168   : > { %v815_v15 = vpop.f32.mrb[63].mxu0  ;;  %2144 = vmatmul.mubr.msk.f32.gmra.mrb[60].mxu1 %vm892_vm1, %v885_v13  ;;  %v887_v17 = vmax.f32 %v2044_v14, 0.0 }
 0x169   : > { %v886_v16 = vmax.f32 %v815_v15, 0.0 }
 0x16b   : > { %2146 = vmatprep.mubr.msk.f32.mxu1 %vm892_vm1, %v886_v16 }
 0x16c   : > { %2147 = vmatmul.mubr.msk.f32.gmra.mrb[62].mxu1 %vm892_vm1, %v887_v17 }
 0x1c3   : > { %v2055_v18 = vpop.f32.mrb[0].mxu1 }
 0x1c4   : > { %v1471_v19 = vmax.f32 %v2055_v18, 0.0  ;;  %v1151_v20 = vpop.f32.mrb[1].mxu1 }
 0x1c5   : > { %v1470_v21 = vmax.f32 %v1151_v20, 0.0 }
 0x1c6   : > { %1535 = vst.msk [vmem:[%s2460_s19 + $0x8] sm:$0xff] %vm246_vm0, %v1471_v19 }
 0x1c7   : > { %1534 = vst.msk [vmem:[%s2460_s19] sm:$0xff] %vm246_vm0, %v1470_v21  ;;  %v2058_v22 = vpop.f32.mrb[2].mxu1 }
 0x1c8   : > { %v1473_v23 = vmax.f32 %v2058_v22, 0.0  ;;  %v1161_v24 = vpop.f32.mrb[3].mxu1 }
 0x1c9   : > { %v1472_v25 = vmax.f32 %v1161_v24, 0.0 }
 0x1ca   : > { %1537 = vst.msk [vmem:[%s2460_s19 + $0x18] sm:$0xff] %vm246_vm0, %v1473_v23 }
 0x1cb   : > { %1536 = vst.msk [vmem:[%s2460_s19 + $0x10] sm:$0xff] %vm246_vm0, %v1472_v25  ;;  %v2061_v26 = vpop.f32.mrb[4].mxu1 }
 0x1cc   : > { %v1475_v27 = vmax.f32 %v2061_v26, 0.0  ;;  %v1171_v28 = vpop.f32.mrb[5].mxu1 }
 0x1cd   : > { %v1474_v29 = vmax.f32 %v1171_v28, 0.0 }
 0x1ce   : > { %1539 = vst.msk [vmem:[%s2460_s19 + $0x28] sm:$0xff] %vm246_vm0, %v1475_v27 }
 0x1cf   : > { %1538 = vst.msk [vmem:[%s2460_s19 + $0x20] sm:$0xff] %vm246_vm0, %v1474_v29  ;;  %v2064_v30 = vpop.f32.mrb[6].mxu1 }
 0x1d0   : > { %v1477_v31 = vmax.f32 %v2064_v30, 0.0  ;;  %v1181_v32 = vpop.f32.mrb[7].mxu1 }
 0x1d1   : > { %v1476_v33 = vmax.f32 %v1181_v32, 0.0 }
 0x1d2   : > { %1541 = vst.msk [vmem:[%s2460_s19 + $0x38] sm:$0xff] %vm246_vm0, %v1477_v31 }
 0x1d3   : > { %1540 = vst.msk [vmem:[%s2460_s19 + $0x30] sm:$0xff] %vm246_vm0, %v1476_v33  ;;  %v2067_v34 = vpop.f32.mrb[8].mxu1 }
 0x1d4   : > { %v1479_v35 = vmax.f32 %v2067_v34, 0.0  ;;  %v1191_v36 = vpop.f32.mrb[9].mxu1 }
 0x1d5   : > { %v1478_v37 = vmax.f32 %v1191_v36, 0.0 }
 0x1d6   : > { %1543 = vst.msk [vmem:[%s2460_s19 + $0x48] sm:$0xff] %vm246_vm0, %v1479_v35 }
 0x1d7   : > { %1542 = vst.msk [vmem:[%s2460_s19 + $0x40] sm:$0xff] %vm246_vm0, %v1478_v37  ;;  %v2070_v38 = vpop.f32.mrb[10].mxu1 }
 0x1d8   : > { %v1481_v39 = vmax.f32 %v2070_v38, 0.0  ;;  %v1201_v40 = vpop.f32.mrb[11].mxu1 }
 0x1d9   : > { %v1480_v41 = vmax.f32 %v1201_v40, 0.0 }
 0x1da   : > { %1545 = vst.msk [vmem:[%s2460_s19 + $0x58] sm:$0xff] %vm246_vm0, %v1481_v39 }
 0x1db   : > { %1544 = vst.msk [vmem:[%s2460_s19 + $0x50] sm:$0xff] %vm246_vm0, %v1480_v41  ;;  %v2073_v42 = vpop.f32.mrb[12].mxu1 }
 0x1dc   : > { %v1483_v43 = vmax.f32 %v2073_v42, 0.0  ;;  %v1211_v44 = vpop.f32.mrb[13].mxu1 }
 0x1dd   : > { %v1482_v45 = vmax.f32 %v1211_v44, 0.0 }
 0x1de   : > { %1547 = vst.msk [vmem:[%s2460_s19 + $0x68] sm:$0xff] %vm246_vm0, %v1483_v43 }
 0x1df   : > { %1546 = vst.msk [vmem:[%s2460_s19 + $0x60] sm:$0xff] %vm246_vm0, %v1482_v45  ;;  %v2076_v46 = vpop.f32.mrb[14].mxu1 }
 0x1e0   : > { %v1485_v47 = vmax.f32 %v2076_v46, 0.0  ;;  %v1221_v48 = vpop.f32.mrb[15].mxu1 }
 0x1e1   : > { %v1484_v49 = vmax.f32 %v1221_v48, 0.0 }
 0x1e2   : > { %1549 = vst.msk [vmem:[%s2460_s19 + $0x78] sm:$0xff] %vm246_vm0, %v1485_v47 }
 0x1e3   : > { %1548 = vst.msk [vmem:[%s2460_s19 + $0x70] sm:$0xff] %vm246_vm0, %v1484_v49  ;;  %v2079_v50 = vpop.f32.mrb[16].mxu1 }
 0x1e4   : > { %v1487_v51 = vmax.f32 %v2079_v50, 0.0  ;;  %v1231_v52 = vpop.f32.mrb[17].mxu1 }
 0x1e5   : > { %v1486_v53 = vmax.f32 %v1231_v52, 0.0 }
 0x1e6   : > { %1551 = vst.msk [vmem:[%s2460_s19 + $0x88] sm:$0xff] %vm246_vm0, %v1487_v51 }
 0x1e7   : > { %1550 = vst.msk [vmem:[%s2460_s19 + $0x80] sm:$0xff] %vm246_vm0, %v1486_v53  ;;  %v2082_v54 = vpop.f32.mrb[18].mxu1 }
 0x1e8   : > { %v1489_v55 = vmax.f32 %v2082_v54, 0.0  ;;  %v1241_v56 = vpop.f32.mrb[19].mxu1 }
 0x1e9   : > { %v1488_v57 = vmax.f32 %v1241_v56, 0.0 }
 0x1ea   : > { %1553 = vst.msk [vmem:[%s2460_s19 + $0x98] sm:$0xff] %vm246_vm0, %v1489_v55 }
 0x1eb   : > { %1552 = vst.msk [vmem:[%s2460_s19 + $0x90] sm:$0xff] %vm246_vm0, %v1488_v57  ;;  %v2085_v58 = vpop.f32.mrb[20].mxu1 }
 0x1ec   : > { %v1491_v59 = vmax.f32 %v2085_v58, 0.0  ;;  %v1251_v60 = vpop.f32.mrb[21].mxu1 }
 0x1ed   : > { %v1490_v61 = vmax.f32 %v1251_v60, 0.0 }
 0x1ee   : > { %1555 = vst.msk [vmem:[%s2460_s19 + $0xa8] sm:$0xff] %vm246_vm0, %v1491_v59 }
 0x1ef   : > { %1554 = vst.msk [vmem:[%s2460_s19 + $0xa0] sm:$0xff] %vm246_vm0, %v1490_v61  ;;  %v2088_v62 = vpop.f32.mrb[22].mxu1 }
 0x1f0   : > { %v1493_v63 = vmax.f32 %v2088_v62, 0.0  ;;  %v1261_v0 = vpop.f32.mrb[23].mxu1 }
 0x1f1   : > { %v1492_v1 = vmax.f32 %v1261_v0, 0.0 }
 0x1f2   : > { %1557 = vst.msk [vmem:[%s2460_s19 + $0xb8] sm:$0xff] %vm246_vm0, %v1493_v63 }
 0x1f3   : > { %1556 = vst.msk [vmem:[%s2460_s19 + $0xb0] sm:$0xff] %vm246_vm0, %v1492_v1  ;;  %v2091_v2 = vpop.f32.mrb[24].mxu1 }
 0x1f4   : > { %v1495_v3 = vmax.f32 %v2091_v2, 0.0  ;;  %v1271_v4 = vpop.f32.mrb[25].mxu1 }
 0x1f5   : > { %v1494_v5 = vmax.f32 %v1271_v4, 0.0 }
 0x1f6   : > { %1559 = vst.msk [vmem:[%s2460_s19 + $0xc8] sm:$0xff] %vm246_vm0, %v1495_v3 }
 0x1f7   : > { %1558 = vst.msk [vmem:[%s2460_s19 + $0xc0] sm:$0xff] %vm246_vm0, %v1494_v5  ;;  %v2094_v6 = vpop.f32.mrb[26].mxu1 }
 0x1f8   : > { %v1497_v7 = vmax.f32 %v2094_v6, 0.0  ;;  %v1281_v8 = vpop.f32.mrb[27].mxu1 }
 0x1f9   : > { %v1496_v9 = vmax.f32 %v1281_v8, 0.0 }
 0x1fa   : > { %1561 = vst.msk [vmem:[%s2460_s19 + $0xd8] sm:$0xff] %vm246_vm0, %v1497_v7 }
 0x1fb   : > { %1560 = vst.msk [vmem:[%s2460_s19 + $0xd0] sm:$0xff] %vm246_vm0, %v1496_v9  ;;  %v2097_v10 = vpop.f32.mrb[28].mxu1 }
 0x1fc   : > { %v1499_v11 = vmax.f32 %v2097_v10, 0.0  ;;  %v1291_v12 = vpop.f32.mrb[29].mxu1 }
 0x1fd   : > { %v1498_v13 = vmax.f32 %v1291_v12, 0.0 }
 0x1fe   : > { %1563 = vst.msk [vmem:[%s2460_s19 + $0xe8] sm:$0xff] %vm246_vm0, %v1499_v11 }
 0x1ff   : > { %1562 = vst.msk [vmem:[%s2460_s19 + $0xe0] sm:$0xff] %vm246_vm0, %v1498_v13  ;;  %v2100_v14 = vpop.f32.mrb[30].mxu1 }
 0x200   : > { %v1501_v15 = vmax.f32 %v2100_v14, 0.0  ;;  %v1301_v16 = vpop.f32.mrb[31].mxu1 }
 0x201   : > { %v1500_v17 = vmax.f32 %v1301_v16, 0.0 }
 0x202   : > { %1565 = vst.msk [vmem:[%s2460_s19 + $0xf8] sm:$0xff] %vm246_vm0, %v1501_v15 }
 0x203   : > { %1564 = vst.msk [vmem:[%s2460_s19 + $0xf0] sm:$0xff] %vm246_vm0, %v1500_v17  ;;  %v2103_v18 = vpop.f32.mrb[32].mxu1 }
 0x204   : > { %v1503_v19 = vmax.f32 %v2103_v18, 0.0  ;;  %v1311_v20 = vpop.f32.mrb[33].mxu1 }
 0x205   : > { %v1502_v21 = vmax.f32 %v1311_v20, 0.0 }
 0x206   : > { %1567 = vst.msk [vmem:[%s2460_s19 + $0x108] sm:$0xff] %vm246_vm0, %v1503_v19 }
 0x207   : > { %1566 = vst.msk [vmem:[%s2460_s19 + $0x100] sm:$0xff] %vm246_vm0, %v1502_v21  ;;  %v2106_v22 = vpop.f32.mrb[34].mxu1 }
 0x208   : > { %v1505_v23 = vmax.f32 %v2106_v22, 0.0  ;;  %v1321_v24 = vpop.f32.mrb[35].mxu1 }
 0x209   : > { %v1504_v25 = vmax.f32 %v1321_v24, 0.0 }
 0x20a   : > { %1569 = vst.msk [vmem:[%s2460_s19 + $0x118] sm:$0xff] %vm246_vm0, %v1505_v23 }
 0x20b   : > { %1568 = vst.msk [vmem:[%s2460_s19 + $0x110] sm:$0xff] %vm246_vm0, %v1504_v25  ;;  %v2109_v26 = vpop.f32.mrb[36].mxu1 }
 0x20c   : > { %v1507_v27 = vmax.f32 %v2109_v26, 0.0  ;;  %v1331_v28 = vpop.f32.mrb[37].mxu1 }
 0x20d   : > { %v1506_v29 = vmax.f32 %v1331_v28, 0.0 }
 0x20e   : > { %1571 = vst.msk [vmem:[%s2460_s19 + $0x128] sm:$0xff] %vm246_vm0, %v1507_v27 }
 0x20f   : > { %1570 = vst.msk [vmem:[%s2460_s19 + $0x120] sm:$0xff] %vm246_vm0, %v1506_v29  ;;  %v2112_v30 = vpop.f32.mrb[38].mxu1 }
 0x210   : > { %v1509_v31 = vmax.f32 %v2112_v30, 0.0  ;;  %v1341_v32 = vpop.f32.mrb[39].mxu1 }
 0x211   : > { %v1508_v33 = vmax.f32 %v1341_v32, 0.0 }
 0x212   : > { %1573 = vst.msk [vmem:[%s2460_s19 + $0x138] sm:$0xff] %vm246_vm0, %v1509_v31 }
 0x213   : > { %1572 = vst.msk [vmem:[%s2460_s19 + $0x130] sm:$0xff] %vm246_vm0, %v1508_v33  ;;  %v2115_v34 = vpop.f32.mrb[40].mxu1 }
 0x214   : > { %v1511_v35 = vmax.f32 %v2115_v34, 0.0  ;;  %v1351_v36 = vpop.f32.mrb[41].mxu1 }
 0x215   : > { %v1510_v37 = vmax.f32 %v1351_v36, 0.0 }
 0x216   : > { %1575 = vst.msk [vmem:[%s2460_s19 + $0x148] sm:$0xff] %vm246_vm0, %v1511_v35 }
 0x217   : > { %1574 = vst.msk [vmem:[%s2460_s19 + $0x140] sm:$0xff] %vm246_vm0, %v1510_v37  ;;  %v2118_v38 = vpop.f32.mrb[42].mxu1 }
 0x218   : > { %v1513_v39 = vmax.f32 %v2118_v38, 0.0  ;;  %v1361_v40 = vpop.f32.mrb[43].mxu1 }
 0x219   : > { %v1512_v41 = vmax.f32 %v1361_v40, 0.0 }
 0x21a   : > { %1577 = vst.msk [vmem:[%s2460_s19 + $0x158] sm:$0xff] %vm246_vm0, %v1513_v39 }
 0x21b   : > { %1576 = vst.msk [vmem:[%s2460_s19 + $0x150] sm:$0xff] %vm246_vm0, %v1512_v41  ;;  %v2121_v42 = vpop.f32.mrb[44].mxu1 }
 0x21c   : > { %v1515_v43 = vmax.f32 %v2121_v42, 0.0  ;;  %v1371_v44 = vpop.f32.mrb[45].mxu1 }
 0x21d   : > { %v1514_v45 = vmax.f32 %v1371_v44, 0.0 }
 0x21e   : > { %1579 = vst.msk [vmem:[%s2460_s19 + $0x168] sm:$0xff] %vm246_vm0, %v1515_v43 }
 0x21f   : > { %1578 = vst.msk [vmem:[%s2460_s19 + $0x160] sm:$0xff] %vm246_vm0, %v1514_v45  ;;  %v2124_v46 = vpop.f32.mrb[46].mxu1 }
 0x220   : > { %v1517_v47 = vmax.f32 %v2124_v46, 0.0  ;;  %v1381_v48 = vpop.f32.mrb[47].mxu1 }
 0x221   : > { %v1516_v49 = vmax.f32 %v1381_v48, 0.0 }
 0x222   : > { %1581 = vst.msk [vmem:[%s2460_s19 + $0x178] sm:$0xff] %vm246_vm0, %v1517_v47 }
 0x223   : > { %1580 = vst.msk [vmem:[%s2460_s19 + $0x170] sm:$0xff] %vm246_vm0, %v1516_v49  ;;  %v2127_v50 = vpop.f32.mrb[48].mxu1 }
 0x224   : > { %v1519_v51 = vmax.f32 %v2127_v50, 0.0  ;;  %v1391_v52 = vpop.f32.mrb[49].mxu1 }
 0x225   : > { %v1518_v53 = vmax.f32 %v1391_v52, 0.0 }
 0x226   : > { %1583 = vst.msk [vmem:[%s2460_s19 + $0x188] sm:$0xff] %vm246_vm0, %v1519_v51 }
 0x227   : > { %1582 = vst.msk [vmem:[%s2460_s19 + $0x180] sm:$0xff] %vm246_vm0, %v1518_v53  ;;  %v2130_v54 = vpop.f32.mrb[50].mxu1 }
 0x228   : > { %v1521_v55 = vmax.f32 %v2130_v54, 0.0  ;;  %v1401_v56 = vpop.f32.mrb[51].mxu1 }
 0x229   : > { %v1520_v57 = vmax.f32 %v1401_v56, 0.0 }
 0x22a   : > { %1585 = vst.msk [vmem:[%s2460_s19 + $0x198] sm:$0xff] %vm246_vm0, %v1521_v55 }
 0x22b   : > { %1584 = vst.msk [vmem:[%s2460_s19 + $0x190] sm:$0xff] %vm246_vm0, %v1520_v57  ;;  %v2133_v58 = vpop.f32.mrb[52].mxu1 }
 0x22c   : > { %v1523_v59 = vmax.f32 %v2133_v58, 0.0  ;;  %v1411_v60 = vpop.f32.mrb[53].mxu1 }
 0x22d   : > { %v1522_v61 = vmax.f32 %v1411_v60, 0.0 }
 0x22e   : > { %1587 = vst.msk [vmem:[%s2460_s19 + $0x1a8] sm:$0xff] %vm246_vm0, %v1523_v59 }
 0x22f   : > { %1586 = vst.msk [vmem:[%s2460_s19 + $0x1a0] sm:$0xff] %vm246_vm0, %v1522_v61  ;;  %v2136_v62 = vpop.f32.mrb[54].mxu1 }
 0x230   : > { %v1525_v63 = vmax.f32 %v2136_v62, 0.0  ;;  %v1421_v0 = vpop.f32.mrb[55].mxu1 }
 0x231   : > { %v1524_v1 = vmax.f32 %v1421_v0, 0.0 }
 0x232   : > { %1589 = vst.msk [vmem:[%s2460_s19 + $0x1b8] sm:$0xff] %vm246_vm0, %v1525_v63 }
 0x233   : > { %1588 = vst.msk [vmem:[%s2460_s19 + $0x1b0] sm:$0xff] %vm246_vm0, %v1524_v1  ;;  %v2139_v2 = vpop.f32.mrb[56].mxu1 }
 0x234   : > { %v1527_v3 = vmax.f32 %v2139_v2, 0.0  ;;  %v1431_v4 = vpop.f32.mrb[57].mxu1 }
 0x235   : > { %v1526_v5 = vmax.f32 %v1431_v4, 0.0 }
 0x236   : > { %1591 = vst.msk [vmem:[%s2460_s19 + $0x1c8] sm:$0xff] %vm246_vm0, %v1527_v3 }
 0x237   : > { %1590 = vst.msk [vmem:[%s2460_s19 + $0x1c0] sm:$0xff] %vm246_vm0, %v1526_v5  ;;  %v2142_v6 = vpop.f32.mrb[58].mxu1 }
 0x238   : > { %v1529_v7 = vmax.f32 %v2142_v6, 0.0  ;;  %v1441_v8 = vpop.f32.mrb[59].mxu1 }
 0x239   : > { %v1528_v9 = vmax.f32 %v1441_v8, 0.0 }
 0x23a   : > { %1593 = vst.msk [vmem:[%s2460_s19 + $0x1d8] sm:$0xff] %vm246_vm0, %v1529_v7 }
 0x23b   : > { %1592 = vst.msk [vmem:[%s2460_s19 + $0x1d0] sm:$0xff] %vm246_vm0, %v1528_v9  ;;  %v2145_v10 = vpop.f32.mrb[60].mxu1 }
 0x23c   : > { %v1531_v11 = vmax.f32 %v2145_v10, 0.0  ;;  %v1451_v12 = vpop.f32.mrb[61].mxu1 }
 0x23d   : > { %v1530_v13 = vmax.f32 %v1451_v12, 0.0 }
 0x23e   : > { %1595 = vst.msk [vmem:[%s2460_s19 + $0x1e8] sm:$0xff] %vm246_vm0, %v1531_v11 }
 0x23f   : > { %1594 = vst.msk [vmem:[%s2460_s19 + $0x1e0] sm:$0xff] %vm246_vm0, %v1530_v13  ;;  %v2148_v14 = vpop.f32.mrb[62].mxu1 }
 0x240   : > { %v1533_v15 = vmax.f32 %v2148_v14, 0.0  ;;  %v1461_v16 = vpop.f32.mrb[63].mxu1 }
 0x241   : > { %v1532_v17 = vmax.f32 %v1461_v16, 0.0 }
 0x242   : > { %1597 = vst.msk [vmem:[%s2460_s19 + $0x1f8] sm:$0xff] %vm246_vm0, %v1533_v15 }
 0x243   : > { %1596 = vst.msk [vmem:[%s2460_s19 + $0x1f0] sm:$0xff] %vm246_vm0, %v1532_v17 }
 0x244 PF: > { %s13_s12 = sadd.s32 1, %s2187_s12  }
 0x245   : > { %p10_p4 = scmp.ge.s32.totalorder %s13_s12, 4  }
 0x247   :  { %12 = sbr.rel (!%p10_p4) target bundleno = 1 (0x1), region = 62 }

</bundles_post_ra>
